<compile_context>
chip_gen: v7x
topology: tpu7x:2x2x1
jax: 0.10.0
libtpu: 0.0.40
codegen_flags: <defaults>
</compile_context>

<pallas_src>
import functools
import math

import jax
import jax.numpy as jnp
from jax.experimental import pallas as pl
from jax.experimental.pallas import tpu as pltpu


def build_pe_buffer(d_model: int, max_len: int = 1000, dtype=jnp.float32) -> jnp.ndarray:
    """Positional-encoding buffer, shape [max_len, d_model] (== torch pe[:, 0, :]).

    Pass dtype=x.dtype and cache the result so the forward pass never casts.
    """
    assert d_model % 2 == 0, "d_model must be even (matches the PyTorch module)"
    position = jnp.arange(max_len, dtype=jnp.float32)[:, None]              # [L, 1]
    div_term = jnp.exp(
        jnp.arange(0, d_model, 2, dtype=jnp.float32) * (-math.log(10000.0) / d_model)
    )                                                                        # [D/2]
    angles = position * div_term                                             # [L, D/2]
    pe = jnp.zeros((max_len, d_model), dtype=jnp.float32)
    pe = pe.at[:, 0::2].set(jnp.sin(angles))
    pe = pe.at[:, 1::2].set(jnp.cos(angles))
    return pe.astype(dtype)                                                  # [L, D]


def _pe_add_kernel(x_ref, pe_ref, o_ref, *, batch: int, d_model: int):
    # x_ref / o_ref: (seq_tile, batch*d_model)  -- lane axis = batch*d_model,
    #                sublane axis = seq tile (contiguous HBM slab per block).
    # pe_ref:        (seq_tile, d_model)
    # Broadcast over batch = statically unrolled add on B lane-slices.  This is
    # pure VPU filler hidden under the HBM DMA; slices are static so they are
    # zero-cost views (lane-tile aligned whenever d_model % 128 == 0).
    pe = pe_ref[...]
    for b in range(batch):
        lo = b * d_model
        hi = lo + d_model
        o_ref[:, lo:hi] = x_ref[:, lo:hi] + pe


def _round_down(v: int, m: int) -> int:
    return (v // m) * m


def _round_up(v: int, m: int) -> int:
    return ((v + m - 1) // m) * m


def _vmem_capacity_bytes() -> int:
    """Physical VMEM per TensorCore; conservative fallback if the query fails."""
    try:
        cap = int(pltpu.get_tpu_info().vmem_capacity_bytes)
        if cap > 0:
            return cap
    except Exception:
        pass
    return 64 * 1024 * 1024  # v7x per-TC VMEM (smallest of the targets)


def _choose_seq_tile(S: int, B: int, D: int, itemsize: int, vmem_budget_bytes: int):
    """Largest sublane-aligned seq tile whose pipelined working set fits the budget."""
    sublane = 8 * (4 // itemsize)            # f32 -> 8, bf16 -> 16, int8/fp8 -> 32
    lane_bd = _round_up(B * D, 128)          # VMEM pads the lane axis to 128
    lane_d = _round_up(D, 128)
    # Live VMEM per seq-tile row: x + out blocks (double-buffered) + pe block
    # (double-buffered).  No large in-kernel intermediates (per-batch slicing).
    per_row = (4 * lane_bd + 2 * lane_d) * itemsize
    rows = max(sublane, vmem_budget_bytes // per_row)
    rows = _round_down(rows, sublane)
    if S >= sublane:
        rows = min(rows, _round_down(S, sublane))
    else:
        rows = S                             # tiny-seq fallback: single full block
    return max(rows, 1), sublane


def positional_encoding_forward(
    x: jnp.ndarray,
    pe: jnp.ndarray,
    *,
    seq_tile: int | None = None,
    vmem_budget_bytes: int | None = None,
    donate_x: bool = False,
) -> jnp.ndarray:
    """x: [S, B, D]; pe: [max_len, D] (or torch-layout [max_len, 1, D]).

    Returns x + pe[:S] broadcast over batch, same dtype/shape as x.
    """
    S, B, D = x.shape
    if pe.ndim == 3:                               # accept the PyTorch buffer layout
        pe = pe.reshape(pe.shape[0], pe.shape[-1])
    max_len, d_pe = pe.shape
    if d_pe != D:
        raise ValueError(f"pe d_model {d_pe} != x d_model {D}")
    if S > max_len:
        raise ValueError(f"seq_len {S} exceeds max_len {max_len}")
    if pe.dtype != x.dtype:
        # Hot path expects pe pre-cast (build_pe_buffer(dtype=x.dtype)); this is a
        # fallback so semantics never break.
        pe = pe.astype(x.dtype)

    itemsize = jnp.dtype(x.dtype).itemsize
    cap = _vmem_capacity_bytes()
    if vmem_budget_bytes is None:
        # ~cap/4 working set: 32 MiB on 128-MiB v5e/v6e, 16 MiB on 64-MiB v7x.
        vmem_budget_bytes = max(8 << 20, min(cap // 4, 32 << 20))
    # Scoped-VMEM limit: 64 MiB on 128-MiB parts, 32 MiB on v7x (<= 48 MiB cap).
    vmem_limit_bytes = int(min(max(32 << 20, 2 * vmem_budget_bytes), max(32 << 20, cap * 3 // 4)))

    ts, sublane = _choose_seq_tile(S, B, D, itemsize, vmem_budget_bytes)
    if seq_tile is not None and S >= sublane:
        ts = max(sublane, min(_round_down(S, sublane), _round_down(seq_tile, sublane)))

    num_blocks = pl.cdiv(S, ts)

    # Close the "pe window past max_len" edge case: if the last (partial) block's
    # window [k*ts, (k+1)*ts) extends beyond pe's rows, zero-pad pe.  The padded
    # rows map to seq positions >= S, so they never reach the output.
    needed_rows = num_blocks * ts
    if needed_rows > max_len:
        pe = jnp.concatenate(
            [pe, jnp.zeros((needed_rows - max_len, D), dtype=pe.dtype)], axis=0
        )

    # Flatten batch into the lane axis: contiguous [S, B, D] -> free [S, B*D] view.
    # Each grid step then moves one contiguous ts*B*D slab and stores lane-dense
    # output whenever B*D >= 128.
    x2 = x.reshape(S, B * D)

    kernel = functools.partial(_pe_add_kernel, batch=B, d_model=D)

    out2 = pl.pallas_call(
        kernel,
        out_shape=jax.ShapeDtypeStruct((S, B * D), x.dtype),
        grid=(num_blocks,),
        in_specs=[
            # x: (ts, B*D); last two block dims are (multiple-of-sublane, full dim).
            pl.BlockSpec((ts, B * D), lambda s: (s, 0)),
            # pe: compact (ts, D) slab; only the first ceil(S/ts) blocks are fetched.
            pl.BlockSpec((ts, D), lambda s: (s, 0)),
        ],
        out_specs=pl.BlockSpec((ts, B * D), lambda s: (s, 0)),
        compiler_params=pltpu.CompilerParams(
            # Seq blocks are independent -> megacore sharding on v7x.
            dimension_semantics=("parallel",),
            vmem_limit_bytes=vmem_limit_bytes,
        ),
        input_output_aliases=({0: 0} if donate_x else {}),
    )(x2, pe)

    return out2.reshape(S, B, D)


if __name__ == "__main__":
    key = jax.random.PRNGKey(0)
    k1, k2, k3 = jax.random.split(key, 3)
    max_len = 1000

    # 1) Module-default-sized demo: d_model=32, seq=8, batch=2, f32.
    d_model, seq_len, batch = 32, 8, 2
    pe = build_pe_buffer(d_model, max_len)
    x = jax.random.normal(k1, (seq_len, batch, d_model), dtype=jnp.float32)
    out = jax.block_until_ready(positional_encoding_forward(x, pe))
    ref = x + pe[:seq_len][:, None, :]
    assert out.shape == x.shape and out.dtype == x.dtype
    assert jnp.allclose(out, ref, atol=1e-6, rtol=1e-6)

    # 2) Lane-dense (B*D = 512) multi-step pipelined grid: forced seq tile of 64.
    S2, B2, D2 = 256, 4, 128
    pe2 = build_pe_buffer(D2, max_len)
    x2 = jax.random.normal(k2, (S2, B2, D2), dtype=jnp.float32)
    out2 = jax.block_until_ready(positional_encoding_forward(x2, pe2, seq_tile=64))
    ref2 = x2 + pe2[:S2][:, None, :]
    assert jnp.allclose(out2, ref2, atol=1e-6, rtol=1e-6)

    # 3) bf16 + partial last block + pe window past max_len (S == max_len, ts=384
    #    -> 3 blocks spanning 1152 rows): exercises the pe zero-pad edge path and
    #    the cached-dtype pe path (no per-call cast).
    S3, B3, D3 = 1000, 2, 64
    pe3 = build_pe_buffer(D3, max_len, dtype=jnp.bfloat16)
    x3 = jax.random.normal(k3, (S3, B3, D3), dtype=jnp.bfloat16)
    out3 = jax.block_until_ready(positional_encoding_forward(x3, pe3, seq_tile=384))
    ref3 = x3 + pe3[:S3][:, None, :]
    assert out3.dtype == jnp.bfloat16
    assert jnp.allclose(
        out3.astype(jnp.float32), ref3.astype(jnp.float32), atol=1e-2, rtol=1e-2
    )

    print("KERNEL_OK")
</pallas_src>

<mosaic_0001>
module attributes {stable_mosaic.version = 11 : i64} {
  func.func @_pe_add_kernel(%arg0: i32, %arg1: memref<8x64xf32, #tpu.memory_space<vmem>>, %arg2: memref<8x32xf32, #tpu.memory_space<vmem>>, %arg3: memref<8x64xf32, #tpu.memory_space<vmem>>) attributes {dimension_semantics = [#tpu.dimension_semantics<parallel>], iteration_bounds = array<i64: 1>, scalar_prefetch = 0 : i64, scratch_operands = 0 : i64, tpu.core_type = #tpu.core_type<tc>, window_params = [{transform_indices = @transform_0, window_bounds = array<i64: 8, 64>}, {transform_indices = @transform_1, window_bounds = array<i64: 8, 32>}, {transform_indices = @transform_2, window_bounds = array<i64: 8, 64>}]} {
    %c0 = arith.constant 0 : index
    %c0_0 = arith.constant 0 : index
    %0 = vector.load %arg2[%c0, %c0_0] : memref<8x32xf32, #tpu.memory_space<vmem>>, vector<8x32xf32>
    %c0_1 = arith.constant 0 : index
    %c0_2 = arith.constant 0 : index
    %1 = vector.load %arg1[%c0_1, %c0_2] : memref<8x64xf32, #tpu.memory_space<vmem>>, vector<8x32xf32>
    %2 = arith.addf %1, %0 : vector<8x32xf32>
    %c0_3 = arith.constant 0 : index
    %c0_4 = arith.constant 0 : index
    %3 = vector.load %arg3[%c0_3, %c0_4] : memref<8x64xf32, #tpu.memory_space<vmem>>, vector<8x32xf32>
    tpu.vector_store %arg3[%c0_3, %c0_4], %2 {strides = array<i32>} : memref<8x64xf32, #tpu.memory_space<vmem>>, vector<8x32xf32>,
    %c0_5 = arith.constant 0 : index
    %c32 = arith.constant 32 : index
    %4 = vector.load %arg1[%c0_5, %c32] : memref<8x64xf32, #tpu.memory_space<vmem>>, vector<8x32xf32>
    %5 = arith.addf %4, %0 : vector<8x32xf32>
    %c0_6 = arith.constant 0 : index
    %c32_7 = arith.constant 32 : index
    %6 = vector.load %arg3[%c0_6, %c32_7] : memref<8x64xf32, #tpu.memory_space<vmem>>, vector<8x32xf32>
    tpu.vector_store %arg3[%c0_6, %c32_7], %5 {strides = array<i32>} : memref<8x64xf32, #tpu.memory_space<vmem>>, vector<8x32xf32>,
    return
  }
  func.func @transform_0(%arg0: i32) -> (i32, i32) {
    %c0_i32 = arith.constant 0 : i32
    %c0_i32_0 = arith.constant 0 : i32
    return %arg0, %c0_i32 : i32, i32
  }
  func.func @transform_1(%arg0: i32) -> (i32, i32) {
    %c0_i32 = arith.constant 0 : i32
    %c0_i32_0 = arith.constant 0 : i32
    return %arg0, %c0_i32 : i32, i32
  }
  func.func @transform_2(%arg0: i32) -> (i32, i32) {
    %c0_i32 = arith.constant 0 : i32
    %c0_i32_0 = arith.constant 0 : i32
    return %arg0, %c0_i32 : i32, i32
  }
}

</mosaic_0001>

<bundles_post_ra>
// kernel: tpu_custom_call.1
= control target key start
LH: loop header
LB: loop body
LE: loop exit
PB: predicated region body
PF: predicated region fallthrough
CT: control target
= control target key end

     0   :  { %vm15_vm0 = vcmask 261120   ;;  %s100_s0 = inlined_call_operand.vmem [shape: f32[8,64], index: 0, kind: input, shape index: {}]   ;;  %s101_s1 = inlined_call_operand.vmem [shape: f32[1000,32], index: 1, kind: input, shape index: {}]   ;;  %s102_s2 = inlined_call_operand.hbm [shape: f32[8,64], index: 2, kind: output, shape index: {}]  }
   0x1   :  { %v12_v0 = vld [vmem:[%s101_s1] sm:$0xff] }
   0x2   :  { %v13_v1 = vld [vmem:[%s100_s0] sm:$0xff] }
   0x3   :  { %7 = vsyncpa [#allocation3], 0  ;;  %v14_v2 = vadd.f32 %v13_v1, %v12_v0  ;;  %s65_s13 = smov 32   ;;  %s66_s14 = smov [#allocation2]   ;;  %vm23_vm1 = vcmask 523520  }
   0x4   :  { %19 = vrot.lane.b32.xlu0 %v12_v0, %s65_s13  ;;  %s31_s15 = sshll.u32 %s66_s14, 4  ;;  %s32_s15 = int_to_ptr.vmem [resolvable:$true] %s31_s15 }
   0x5   :  { %16 = vst.msk [vmem:[#allocation2] sm:$0xff] %vm15_vm0, %v14_v2  ;;  %s41_s16 = scalar_lea.vmem %s32_s15, 128  ;;  %p46_p1 = scmp.lt.s32.totalorder %s32_s15, %s32_s15 }
   0x6   :  { %p42_p0 = scmp.ne.s32.totalorder %s32_s15, %s41_s16  ;;  %p47_p2 = scmp.lt.s32.totalorder %s41_s16, %s41_s16 }
   0x8   :  { %p48_p3 = por %p47_p2, %p46_p1 }
   0xa   :  { %p49_p4 = pnand %p48_p3, %p42_p0 }
  0x76   :  { %v20_v3 = vpop.permute.xlu0 %19 }
  0x77   :  { %v22_v4 = vadd.f32 %v20_v3, %v13_v1 }
  0x79   :  { %24 = vst.msk [vmem:[#allocation2] sm:$0xff] %vm23_vm1, %v22_v4 }
  0x7a   :  { %52 = shalt.err (!%p49_p4)
}
  0x7b   :  { %s53_s17 = scalar_lea.hbm %s102_s2, 128 }
  0x7c   :  { %p54_p5 = scmp.ne.s32.totalorder %s102_s2, %s53_s17  ;;  %p57_p6 = scmp.lt.u32.totalorder %s53_s17, %s102_s2 }
  0x7e   :  { %p59_p7 = pnand %p57_p6, %p54_p5 }
  0x80   :  { %62 = shalt.err (!%p59_p7)
}
  0x81   :  { %34 = dma.vmem_to_hbm [thread:$0]  %s32_s15, 128, %s102_s2, [#allocation3]  }
  0x82   :  { %63 = dma.done.wait [#allocation3], 128  }
  0x83   :  { %64 = vsyncadd [#allocation3], 4294967168 }
  0x84   :  { %38 = vsyncpa [#allocation3], 1 }

</bundles_post_ra>
